<compile_context>
chip_gen: v7x
topology: tpu7x:2x2x1
jax: 0.10.0
libtpu: 0.0.40
codegen_flags: <defaults>
</compile_context>

<pallas_src>
import functools

import jax
import jax.numpy as jnp
from jax.experimental import pallas as pl
from jax.experimental.pallas import tpu as pltpu

H = 768     # WavLM hidden size (hardcoded 768 in the module's cls_head)
CLS = 4     # cls_len


# ---------------------------------------------------------------------------
# Single-shot path: whole [B, T, H] block lives in VMEM, one kernel invocation.
# ---------------------------------------------------------------------------
def _cls_head_single_kernel(h_ref, w_ref, b_ref, o_ref, *, t_total):
    # Dropout is identity in eval mode; accumulate in f32 regardless of input dtype.
    pooled = jnp.sum(h_ref[...].astype(jnp.float32), axis=1) * (1.0 / float(t_total))
    # (B, 768) @ (768, CLS): tiny GEMV, essentially one vmatmul — not an MXU lever.
    logits = jnp.dot(pooled, w_ref[...].astype(jnp.float32),
                     preferred_element_type=jnp.float32)
    o_ref[...] = (logits + b_ref[...]).astype(o_ref.dtype)


# ---------------------------------------------------------------------------
# Streaming path (long T): time axis tiled, running f32 sum in VMEM scratch.
# ---------------------------------------------------------------------------
def _cls_head_stream_kernel(h_ref, w_ref, b_ref, o_ref, acc_ref, *, t_total):
    t = pl.program_id(0)

    @pl.when(t == 0)
    def _():
        acc_ref[...] = jnp.zeros_like(acc_ref)

    acc_ref[...] += jnp.sum(h_ref[...].astype(jnp.float32), axis=1)

    @pl.when(t == pl.num_programs(0) - 1)
    def _():
        pooled = acc_ref[...] * (1.0 / float(t_total))           # mean over time
        logits = jnp.dot(pooled, w_ref[...].astype(jnp.float32),
                         preferred_element_type=jnp.float32)
        o_ref[...] = (logits + b_ref[...]).astype(o_ref.dtype)


def _pick_time_tile(t_len, max_tile=512):
    """Largest divisor of t_len that is <= max_tile and a multiple of 8 (or t_len)."""
    if t_len <= max_tile:
        return t_len
    for cand in range(min(max_tile, t_len), 0, -1):
        if t_len % cand == 0 and (cand % 8 == 0 or cand == t_len):
            return cand
    return t_len


def wavlm_ctc_cls_head(hidden_states, w, b, *, t_tile=None, single_shot_bytes=4 << 20):
    """hidden_states: [B, T, H] (f32 or bf16), w: [H, CLS] (pre-transposed from the
    PyTorch [CLS, H] weight), b: [CLS]  ->  [B, CLS] f32 logits."""
    Bx, Tx, Hx = hidden_states.shape
    Cx = w.shape[1]
    b2d = b.reshape(1, Cx).astype(jnp.float32)

    in_bytes = Bx * Tx * Hx * jnp.dtype(hidden_states.dtype).itemsize
    if t_tile is None and in_bytes <= single_shot_bytes:
        # Whole input fits comfortably in VMEM (even on v7x): single invocation,
        # no grid, no scratch, no init/finalize branches.
        kernel = functools.partial(_cls_head_single_kernel, t_total=Tx)
        return pl.pallas_call(
            kernel,
            out_shape=jax.ShapeDtypeStruct((Bx, Cx), jnp.float32),
        )(hidden_states, w, b2d)

    if t_tile is None:
        t_tile = _pick_time_tile(Tx)
    assert Tx % t_tile == 0, (Tx, t_tile)  # TODO(synk): ragged T would need a masked final tile.

    kernel = functools.partial(_cls_head_stream_kernel, t_total=Tx)
    return pl.pallas_call(
        kernel,
        out_shape=jax.ShapeDtypeStruct((Bx, Cx), jnp.float32),
        grid=(Tx // t_tile,),
        in_specs=[
            pl.BlockSpec((Bx, t_tile, Hx), lambda t: (0, t, 0)),
            pl.BlockSpec((Hx, Cx), lambda t: (0, 0)),
            pl.BlockSpec((1, Cx), lambda t: (0, 0)),
        ],
        out_specs=pl.BlockSpec((Bx, Cx), lambda t: (0, 0)),
        scratch_shapes=[pltpu.VMEM((Bx, Hx), jnp.float32)],
        compiler_params=pltpu.CompilerParams(
            dimension_semantics=("arbitrary",),  # time axis is a reduction
        ),
    )(hidden_states, w, b2d)


if __name__ == "__main__":
    B, T = 2, 16
    key = jax.random.PRNGKey(0)
    k_h, k_w, k_b = jax.random.split(key, 3)

    # Synthetic "WavLM backbone output" hidden states.
    hidden_states = jax.random.normal(k_h, (B, T, H), dtype=jnp.float32)

    # Deterministic cls_head params (nn.Linear(768, cls_len)-style init).
    bound = 1.0 / (H ** 0.5)
    w_torch = jax.random.uniform(k_w, (CLS, H), jnp.float32, -bound, bound)  # [out, in]
    b_cls = jax.random.uniform(k_b, (CLS,), jnp.float32, -bound, bound)
    w_cls = w_torch.T  # [H, CLS] so the kernel computes pooled @ W + b

    def ref_fn(h):
        pooled = jnp.mean(h.astype(jnp.float32), axis=1)
        return jnp.dot(pooled, w_cls, preferred_element_type=jnp.float32,
                       precision=jax.lax.Precision.HIGHEST) + b_cls

    # 1) Single-shot path (whole input resident in VMEM), f32 input.
    out = jax.block_until_ready(wavlm_ctc_cls_head(hidden_states, w_cls, b_cls))
    assert out.shape == (B, CLS)
    assert jnp.allclose(out, ref_fn(hidden_states), atol=1e-4, rtol=1e-4), out

    # 2) Single-shot path with bf16 hidden states (halved HBM traffic, f32 accumulation).
    h_bf16 = hidden_states.astype(jnp.bfloat16)
    out_bf16 = jax.block_until_ready(wavlm_ctc_cls_head(h_bf16, w_cls, b_cls))
    assert jnp.allclose(out_bf16, ref_fn(h_bf16), atol=1e-3, rtol=1e-3), out_bf16

    # 3) Streaming path exercised explicitly with a forced (large-ish) time tile.
    T_long = 128
    h_long = jax.random.normal(jax.random.PRNGKey(1), (B, T_long, H), dtype=jnp.float32)
    out_long = jax.block_until_ready(
        wavlm_ctc_cls_head(h_long, w_cls, b_cls, t_tile=64))
    assert jnp.allclose(out_long, ref_fn(h_long), atol=1e-4, rtol=1e-4), out_long

    print("KERNEL_OK")
</pallas_src>

<mosaic_0001>
module attributes {stable_mosaic.version = 11 : i64} {
  func.func @_cls_head_single_kernel(%arg0: memref<2x16x768xf32, #tpu.memory_space<vmem>>, %arg1: memref<768x4xf32, #tpu.memory_space<vmem>>, %arg2: memref<1x4xf32, #tpu.memory_space<vmem>>, %arg3: memref<2x4xf32, #tpu.memory_space<vmem>>) attributes {dimension_semantics = [], scalar_prefetch = 0 : i64, scratch_operands = 0 : i64, tpu.core_type = #tpu.core_type<tc>} {
    %c0 = arith.constant 0 : index
    %c0_0 = arith.constant 0 : index
    %c0_1 = arith.constant 0 : index
    %0 = vector.load %arg0[%c0, %c0_0, %c0_1] : memref<2x16x768xf32, #tpu.memory_space<vmem>>, vector<2x16x768xf32>
    %cst = arith.constant dense<0.000000e+00> : vector<2x768xf32>
    %1 = vector.multi_reduction <add>, %0, %cst [1] : vector<2x16x768xf32> to vector<2x768xf32>
    %cst_2 = arith.constant 6.250000e-02 : f32
    %2 = vector.broadcast %cst_2 : f32 to vector<2x768xf32>
    %3 = arith.mulf %1, %2 : vector<2x768xf32>
    %c0_3 = arith.constant 0 : index
    %c0_4 = arith.constant 0 : index
    %4 = vector.load %arg1[%c0_3, %c0_4] : memref<768x4xf32, #tpu.memory_space<vmem>>, vector<768x4xf32>
    %cst_5 = arith.constant dense<0.000000e+00> : vector<2x4xf32>
    %5 = tpu.matmul %3, %4, %cst_5 {dimension_numbers = #tpu.dot_dimension_numbers<[1], [0], [0], [1], [0, 0, 1, 1], [], []>} : vector<2x768xf32>, vector<768x4xf32>, vector<2x4xf32> -> vector<2x4xf32>
    %c0_6 = arith.constant 0 : index
    %c0_7 = arith.constant 0 : index
    %6 = vector.load %arg2[%c0_6, %c0_7] : memref<1x4xf32, #tpu.memory_space<vmem>>, vector<1x4xf32>
    %7 = vector.broadcast %6 : vector<1x4xf32> to vector<2x4xf32>
    %8 = arith.addf %5, %7 : vector<2x4xf32>
    %c0_8 = arith.constant 0 : index
    %c0_9 = arith.constant 0 : index
    %9 = vector.load %arg3[%c0_8, %c0_9] : memref<2x4xf32, #tpu.memory_space<vmem>>, vector<2x4xf32>
    tpu.vector_store %arg3[%c0_8, %c0_9], %8 {strides = array<i32>} : memref<2x4xf32, #tpu.memory_space<vmem>>, vector<2x4xf32>,
    return
  }
}

</mosaic_0001>

<bundles_post_ra>
// kernel: tpu_custom_call.1
= control target key start
LH: loop header
LB: loop body
LE: loop exit
PB: predicated region body
PF: predicated region fallthrough
CT: control target
= control target key end

     0   :  { %vm250_vm0 = vcmask 1041409   ;;  %s1163_s0 = inlined_call_operand.vmem [shape: f32[2,16,768], index: 0, kind: input, shape index: {}]   ;;  %s1164_s1 = inlined_call_operand.vmem [shape: f32[768,4], index: 1, kind: input, shape index: {}]   ;;  %s1165_s2 = inlined_call_operand.vmem [shape: f32[1,4], index: 2, kind: input, shape index: {}]   ;;  %s1166_s3 = inlined_call_operand.hbm [shape: f32[2,4], index: 3, kind: output, shape index: {}]  }
   0x1   :  { %v151_v0 = vld [vmem:[%s1164_s1 + $0x80] sm:$0xff]  ;;  %v152_v1 = vld [vmem:[%s1164_s1 + $0x88] sm:$0xff]  ;;  %v153_v11 = vld [vmem:[%s1164_s1 + $0x90] sm:$0xff] }
   0x2   :  { %v135_v2 = vld [vmem:[%s1164_s1] sm:$0xff]  ;;  %v595_v3 = vpack.c.bf16 %v152_v1, %v151_v0  ;;  %v136_v4 = vld [vmem:[%s1164_s1 + $0x8] sm:$0xff]  ;;  %v154_v13 = vld [vmem:[%s1164_s1 + $0x98] sm:$0xff] }
   0x3   :  { %v183_v5 = vld [vmem:[%s1164_s1 + $0x180] sm:$0xff]  ;;  %v184_v6 = vld [vmem:[%s1164_s1 + $0x188] sm:$0xff]  ;;  %v597_v7 = vpack.c.bf16 %v136_v4, %v135_v2  ;;  %v137_v14 = vld [vmem:[%s1164_s1 + $0x10] sm:$0xff]  ;;  %v599_v16 = vpack.c.bf16 %v154_v13, %v153_v11 }
   0x4   :  { %v627_v8 = vpack.c.bf16 %v184_v6, %v183_v5  ;;  %v167_v9 = vld [vmem:[%s1164_s1 + $0x100] sm:$0xff]  ;;  %v168_v10 = vld [vmem:[%s1164_s1 + $0x108] sm:$0xff]  ;;  %596 = vmatprep.subr.bf16.mxu0 %v595_v3  ;;  %v138_v15 = vld [vmem:[%s1164_s1 + $0x18] sm:$0xff] }
   0x5   :  { %v629_v12 = vpack.c.bf16 %v168_v10, %v167_v9  ;;  %598 = vmatpush3.bf16.msra.mxu0 %v597_v7  ;;  %v601_v17 = vpack.c.bf16 %v138_v15, %v137_v14  ;;  %v185_v18 = vld [vmem:[%s1164_s1 + $0x190] sm:$0xff]  ;;  %v186_v19 = vld [vmem:[%s1164_s1 + $0x198] sm:$0xff]  ;;  %v155_v23 = vld [vmem:[%s1164_s1 + $0xa0] sm:$0xff] }
   0x6   :  { %628 = vmatprep.subr.bf16.mxu1 %v627_v8  ;;  %v169_v20 = vld [vmem:[%s1164_s1 + $0x110] sm:$0xff]  ;;  %v631_v21 = vpack.c.bf16 %v186_v19, %v185_v18  ;;  %v170_v22 = vld [vmem:[%s1164_s1 + $0x118] sm:$0xff]  ;;  %v156_v24 = vld [vmem:[%s1164_s1 + $0xa8] sm:$0xff]  ;;  %600 = vmatprep.subr.bf16.mxu0 %v599_v16 }
   0x7   :  { %630 = vmatpush3.bf16.msra.mxu1 %v629_v12  ;;  %v633_v25 = vpack.c.bf16 %v170_v22, %v169_v20  ;;  %v603_v26 = vpack.c.bf16 %v156_v24, %v155_v23  ;;  %v139_v27 = vld [vmem:[%s1164_s1 + $0x20] sm:$0xff]  ;;  %v140_v28 = vld [vmem:[%s1164_s1 + $0x28] sm:$0xff]  ;;  %v157_v35 = vld [vmem:[%s1164_s1 + $0xb0] sm:$0xff] }
   0x8   :  { %v187_v29 = vld [vmem:[%s1164_s1 + $0x1a0] sm:$0xff]  ;;  %632 = vmatprep.subr.bf16.mxu1 %v631_v21  ;;  %v188_v30 = vld [vmem:[%s1164_s1 + $0x1a8] sm:$0xff]  ;;  %v605_v33 = vpack.c.bf16 %v140_v28, %v139_v27  ;;  %v158_v36 = vld [vmem:[%s1164_s1 + $0xb8] sm:$0xff] }
   0x9   :  { %v171_v31 = vld [vmem:[%s1164_s1 + $0x120] sm:$0xff]  ;;  %v172_v32 = vld [vmem:[%s1164_s1 + $0x128] sm:$0xff]  ;;  %602 = vmatpush3.bf16.msra.mxu0 %v601_v17  ;;  %v635_v34 = vpack.c.bf16 %v188_v30, %v187_v29  ;;  %v141_v37 = vld [vmem:[%s1164_s1 + $0x30] sm:$0xff]  ;;  %v607_v39 = vpack.c.bf16 %v158_v36, %v157_v35 }
   0xa   :  { %604 = vmatprep.subr.bf16.mxu0 %v603_v26  ;;  %v637_v38 = vpack.c.bf16 %v172_v32, %v171_v31  ;;  %v142_v40 = vld [vmem:[%s1164_s1 + $0x38] sm:$0xff]  ;;  %v189_v41 = vld [vmem:[%s1164_s1 + $0x1b0] sm:$0xff]  ;;  %v159_v46 = vld [vmem:[%s1164_s1 + $0xc0] sm:$0xff] }
   0xb   :  { %634 = vmatpush3.bf16.msra.mxu1 %v633_v25  ;;  %v190_v42 = vld [vmem:[%s1164_s1 + $0x1b8] sm:$0xff]  ;;  %v173_v44 = vld [vmem:[%s1164_s1 + $0x130] sm:$0xff]  ;;  %v160_v47 = vld [vmem:[%s1164_s1 + $0xc8] sm:$0xff]  ;;  %v609_v48 = vpack.c.bf16 %v142_v40, %v141_v37 }
   0xc   :  { %636 = vmatprep.subr.bf16.mxu1 %v635_v34  ;;  %v639_v43 = vpack.c.bf16 %v190_v42, %v189_v41  ;;  %v174_v45 = vld [vmem:[%s1164_s1 + $0x138] sm:$0xff]  ;;  %v191_v49 = vld [vmem:[%s1164_s1 + $0x1c0] sm:$0xff]  ;;  %v192_v50 = vld [vmem:[%s1164_s1 + $0x1c8] sm:$0xff]  ;;  %v611_v52 = vpack.c.bf16 %v160_v47, %v159_v46 }
   0xd   :  { %606 = vmatpush3.bf16.msra.mxu0 %v605_v33  ;;  %v641_v51 = vpack.c.bf16 %v174_v45, %v173_v44  ;;  %v143_v53 = vld [vmem:[%s1164_s1 + $0x40] sm:$0xff]  ;;  %v144_v54 = vld [vmem:[%s1164_s1 + $0x48] sm:$0xff]  ;;  %v643_v56 = vpack.c.bf16 %v192_v50, %v191_v49  ;;  %v161_v58 = vld [vmem:[%s1164_s1 + $0xd0] sm:$0xff] }
   0xe   :  { %608 = vmatprep.subr.bf16.mxu0 %v607_v39  ;;  %v175_v55 = vld [vmem:[%s1164_s1 + $0x140] sm:$0xff]  ;;  %v176_v57 = vld [vmem:[%s1164_s1 + $0x148] sm:$0xff]  ;;  %v162_v59 = vld [vmem:[%s1164_s1 + $0xd8] sm:$0xff]  ;;  %v613_v62 = vpack.c.bf16 %v144_v54, %v143_v53 }
   0xf   :  { %638 = vmatpush3.bf16.msra.mxu1 %v637_v38  ;;  %v193_v60 = vld [vmem:[%s1164_s1 + $0x1d0] sm:$0xff]  ;;  %v194_v61 = vld [vmem:[%s1164_s1 + $0x1d8] sm:$0xff]  ;;  %v645_v2 = vpack.c.bf16 %v176_v57, %v175_v55  ;;  %v615_v3 = vpack.c.bf16 %v162_v59, %v161_v58  ;;  %v163_v5 = vld [vmem:[%s1164_s1 + $0xe0] sm:$0xff] }
  0x10   :  { %640 = vmatprep.subr.bf16.mxu1 %v639_v43  ;;  %v145_v63 = vld [vmem:[%s1164_s1 + $0x50] sm:$0xff]  ;;  %v146_v0 = vld [vmem:[%s1164_s1 + $0x58] sm:$0xff]  ;;  %v164_v6 = vld [vmem:[%s1164_s1 + $0xe8] sm:$0xff]  ;;  %v647_v7 = vpack.c.bf16 %v194_v61, %v193_v60 }
  0x11   :  { %610 = vmatpush3.bf16.msra.mxu0 %v609_v48  ;;  %v177_v1 = vld [vmem:[%s1164_s1 + $0x150] sm:$0xff]  ;;  %v178_v4 = vld [vmem:[%s1164_s1 + $0x158] sm:$0xff]  ;;  %v890_v8 = vld [vmem:[%s1164_s1 + $0x60] sm:$0xff]  ;;  %v617_v16 = vpack.c.bf16 %v146_v0, %v145_v63  ;;  %v619_v23 = vpack.c.bf16 %v164_v6, %v163_v5 }
  0x12   :  { %612 = vmatprep.subr.bf16.mxu0 %v611_v52  ;;  %v895_v9 = vld [vmem:[%s1164_s1 + $0x68] sm:$0xff]  ;;  %v195_v10 = vld [vmem:[%s1164_s1 + $0x1e0] sm:$0xff]  ;;  %v916_v14 = vld [vmem:[%s1164_s1 + $0xf0] sm:$0xff]  ;;  %v649_v22 = vpack.c.bf16 %v178_v4, %v177_v1 }
  0x13   :  { %642 = vmatpush3.bf16.msra.mxu1 %v641_v51  ;;  %v196_v11 = vld [vmem:[%s1164_s1 + $0x1e8] sm:$0xff]  ;;  %v906_v12 = vld [vmem:[%s1164_s1 + $0x160] sm:$0xff]  ;;  %v921_v15 = vld [vmem:[%s1164_s1 + $0xf8] sm:$0xff]  ;;  %v621_v33 = vpack.c.bf16 %v895_v9, %v890_v8 }
  0x14   :  { %644 = vmatprep.subr.bf16.mxu1 %v643_v56  ;;  %v911_v13 = vld [vmem:[%s1164_s1 + $0x168] sm:$0xff]  ;;  %v926_v17 = vld [vmem:[%s1164_s1 + $0x70] sm:$0xff]  ;;  %v931_v18 = vld [vmem:[%s1164_s1 + $0x78] sm:$0xff]  ;;  %v651_v27 = vpack.c.bf16 %v196_v11, %v195_v10  ;;  %v623_v35 = vpack.c.bf16 %v921_v15, %v916_v14 }
  0x15   :  { %614 = vmatpush3.bf16.msra.mxu0 %v613_v62  ;;  %v936_v19 = vld [vmem:[%s1164_s1 + $0x1f0] sm:$0xff]  ;;  %v941_v20 = vld [vmem:[%s1164_s1 + $0x1f8] sm:$0xff]  ;;  %v16_v21 = vld [vmem:[%s1163_s0 + $0x8] sm:$0xff]  ;;  %v653_v34 = vpack.c.bf16 %v911_v13, %v906_v12  ;;  %v625_v46 = vpack.c.bf16 %v931_v18, %v926_v17 }
  0x16   :  { %616 = vmatprep.subr.bf16.mxu0 %v615_v3  ;;  %v22_v24 = vld [vmem:[%s1163_s0 + $0x38] sm:$0xff]  ;;  %v28_v25 = vld [vmem:[%s1163_s0 + $0x68] sm:$0xff]  ;;  %v958_v30 = vld [vmem:[%s1164_s1 + $0x170] sm:$0xff]  ;;  %v655_v47 = vpack.c.bf16 %v941_v20, %v936_v19 }
  0x17   :  { %646 = vmatpush3.bf16.msra.mxu1 %v645_v2  ;;  %v34_v26 = vld [vmem:[%s1163_s0 + $0x98] sm:$0xff]  ;;  %v46_v28 = vadd.f32 %v22_v24, %v16_v21  ;;  %v15_v32 = vld [vmem:[%s1163_s0] sm:$0xff]  ;;  %v21_v36 = vld [vmem:[%s1163_s0 + $0x30] sm:$0xff] }
  0x18   :  { %648 = vmatprep.subr.bf16.mxu1 %v647_v7  ;;  %v88_v29 = vadd.f32 %v34_v26, %v28_v25  ;;  %v963_v31 = vld [vmem:[%s1164_s1 + $0x178] sm:$0xff]  ;;  %v27_v37 = vld [vmem:[%s1163_s0 + $0x60] sm:$0xff]  ;;  %v33_v38 = vld [vmem:[%s1163_s0 + $0x90] sm:$0xff]  ;;  %v39_v41 = vadd.f32 %v21_v36, %v15_v32 }
  0x19   :  { %618 = vmatpush3.bf16.msra.mxu0 %v617_v16  ;;  %v47_v39 = vrot.slane %v46_v28, 4  ;;  %v81_v42 = vadd.f32 %v33_v38, %v27_v37  ;;  %v215_v43 = vld [vmem:[%s1164_s1 + $0x280] sm:$0xff]  ;;  %v216_v44 = vld [vmem:[%s1164_s1 + $0x288] sm:$0xff]  ;;  %v18_v45 = vld [vmem:[%s1163_s0 + $0x18] sm:$0xff]  ;;  %v657_v48 = vpack.c.bf16 %v963_v31, %v958_v30 }
  0x1a   :  { %v89_v40 = vrot.slane %v88_v29, 4  ;;  %620 = vmatprep.subr.bf16.mxu0 %v619_v23  ;;  %v24_v49 = vld [vmem:[%s1163_s0 + $0x48] sm:$0xff]  ;;  %v30_v50 = vld [vmem:[%s1163_s0 + $0x78] sm:$0xff]  ;;  %v40_v54 = vrot.slane %v39_v41, 4  ;;  %v1010_v56 = vld [vmem:[%s1164_s1 + $0x200] sm:$0xff]  ;;  %v659_v59 = vpack.c.bf16 %v216_v44, %v215_v43 }
  0x1b   :  { %650 = vmatpush3.bf16.msra.mxu1 %v649_v22  ;;  %v36_v51 = vld [vmem:[%s1163_s0 + $0xa8] sm:$0xff]  ;;  %v48_v52 = vadd.f32 %v47_v39, %v46_v28  ;;  %v82_v55 = vrot.slane %v81_v42, 4  ;;  %v17_v58 = vld [vmem:[%s1163_s0 + $0x10] sm:$0xff]  ;;  %v60_v60 = vadd.f32 %v24_v49, %v18_v45  ;;  %v23_v63 = vld [vmem:[%s1163_s0 + $0x40] sm:$0xff] }
  0x1c   :  { %652 = vmatprep.subr.bf16.mxu1 %v651_v27  ;;  %v90_v53 = vadd.f32 %v89_v40, %v88_v29  ;;  %v1015_v57 = vld [vmem:[%s1164_s1 + $0x208] sm:$0xff]  ;;  %v102_v61 = vadd.f32 %v36_v51, %v30_v50  ;;  %v29_v0 = vld [vmem:[%s1163_s0 + $0x70] sm:$0xff]  ;;  %v35_v1 = vld [vmem:[%s1163_s0 + $0xa0] sm:$0xff]  ;;  %v41_v4 = vadd.f32 %v40_v54, %v39_v41  ;;  %v53_v8 = vadd.f32 %v23_v63, %v17_v58 }
  0x1d   :  { %v661_v62 = vpack.c.bf16 %v1015_v57, %v1010_v56  ;;  %622 = vmatpush3.bf16.msra.mxu0 %v621_v33  ;;  %v49_v2 = vrot.slane %v48_v52, 2  ;;  %v83_v5 = vadd.f32 %v82_v55, %v81_v42  ;;  %v61_v6 = vrot.slane %v60_v60, 4  ;;  %v219_v55 = vld [vmem:[%s1164_s1 + $0x2a0] sm:$0xff]  ;;  %v220_v58 = vld [vmem:[%s1164_s1 + $0x2a8] sm:$0xff] }
  0x1e   :  { %v91_v3 = vrot.slane %v90_v53, 2  ;;  %624 = vmatprep.subr.bf16.mxu0 %v623_v35  ;;  %v103_v7 = vrot.slane %v102_v61, 4  ;;  %v95_v9 = vadd.f32 %v35_v1, %v29_v0  ;;  %v42_v12 = vrot.slane %v41_v4, 2  ;;  %v218_v35 = vld [vmem:[%s1164_s1 + $0x298] sm:$0xff] }
  0x1f   :  { %654 = vmatpush3.bf16.msra.mxu1 %v653_v34  ;;  %v50_v10 = vadd.f32 %v49_v2, %v48_v52  ;;  %v84_v13 = vrot.slane %v83_v5, 2  ;;  %v62_v14 = vadd.f32 %v61_v6, %v60_v60  ;;  %v54_v16 = vrot.slane %v53_v8, 4  ;;  %v217_v34 = vld [vmem:[%s1164_s1 + $0x290] sm:$0xff] }
  0x20   :  { %656 = vmatprep.subr.bf16.mxu1 %v655_v47  ;;  %v92_v11 = vadd.f32 %v91_v3, %v90_v53  ;;  %v104_v15 = vadd.f32 %v103_v7, %v102_v61  ;;  %v96_v17 = vrot.slane %v95_v9, 4  ;;  %v43_v20 = vadd.f32 %v42_v12, %v41_v4  ;;  %v201_v52 = vld [vmem:[%s1164_s1 + $0x210] sm:$0xff]  ;;  %v202_v53 = vld [vmem:[%s1164_s1 + $0x218] sm:$0xff] }
  0x21   :  { %626 = vmatpush3.bf16.msra.mxu0 %v625_v46  ;;  %v51_v18 = vrot.slane %v50_v10, 1  ;;  %v85_v21 = vadd.f32 %v84_v13, %v83_v5  ;;  %v63_v22 = vrot.slane %v62_v14, 2  ;;  %v55_v24 = vadd.f32 %v54_v16, %v53_v8 }
  0x22   :  { %v93_v19 = vrot.slane %v92_v11, 1  ;;  %660 = vmatprep.subr.bf16.mxu0 %v659_v59  ;;  %v105_v23 = vrot.slane %v104_v15, 2  ;;  %v97_v25 = vadd.f32 %v96_v17, %v95_v9  ;;  %v44_v28 = vrot.slane %v43_v20, 1 }
  0x23   :  { %658 = vmatpush3.bf16.msra.mxu1 %v657_v48  ;;  %v52_v26 = vadd.f32 %v51_v18, %v50_v10  ;;  %v86_v29 = vrot.slane %v85_v21, 1  ;;  %v64_v30 = vadd.f32 %v63_v22, %v62_v14  ;;  %v56_v32 = vrot.slane %v55_v24, 2 }
  0x24   :  { %v94_v27 = vadd.f32 %v93_v19, %v92_v11  ;;  %v106_v31 = vadd.f32 %v105_v23, %v104_v15  ;;  %v98_v33 = vrot.slane %v97_v25, 2  ;;  %v45_v38 = vadd.f32 %v44_v28, %v43_v20 }
  0x25   :  { %v124_v36 = vmul.f32 0.0625, %v52_v26  ;;  %v87_v39 = vadd.f32 %v86_v29, %v85_v21  ;;  %v65_v40 = vrot.slane %v64_v30, 1  ;;  %v57_v42 = vadd.f32 %v56_v32, %v55_v24 }
  0x26   :  { %v130_v37 = vmul.f32 0.0625, %v94_v27  ;;  %v107_v41 = vrot.slane %v106_v31, 1  ;;  %v99_v43 = vadd.f32 %v98_v33, %v97_v25  ;;  %v123_v45 = vmul.f32 0.0625, %v45_v38 }
  0x27   :  { %v129_v46 = vmul.f32 0.0625, %v87_v39  ;;  %v663_v47 = vpack.c.bf16 %v218_v35, %v217_v34  ;;  %v66_v48 = vadd.f32 %v65_v40, %v64_v30  ;;  %v58_v50 = vrot.slane %v57_v42, 1 }
  0x28   :  { %v252_v44 = vsel %vm250_vm0, %v130_v37, %v124_v36  ;;  %v108_v49 = vadd.f32 %v107_v41, %v106_v31  ;;  %v100_v51 = vrot.slane %v99_v43, 1 }
  0x29   :  { %327 = vmatprep.mubr.f32.mxu0 %v252_v44  ;;  %v251_v54 = vsel %vm250_vm0, %v129_v46, %v123_v45 }
  0x2a   :  { %8 = vsyncpa [#allocation3], 0  ;;  %328 = vmatmul.mubr.f32.vlgmr.msra.gmra.mrb[0].mxu0 %v251_v54  ;;  %v126_v59 = vmul.f32 0.0625, %v66_v48  ;;  %v132_v60 = vmul.f32 0.0625, %v108_v49  ;;  %v59_v61 = vadd.f32 %v58_v50, %v57_v42  ;;  %v101_v63 = vadd.f32 %v100_v51, %v99_v43  ;;  %v203_v0 = vld [vmem:[%s1164_s1 + $0x220] sm:$0xff]  ;;  %v204_v1 = vld [vmem:[%s1164_s1 + $0x228] sm:$0xff] }
  0x2b   :  { %v20_v2 = vld [vmem:[%s1163_s0 + $0x28] sm:$0xff]  ;;  %v26_v3 = vld [vmem:[%s1163_s0 + $0x58] sm:$0xff]  ;;  %662 = vmatpush3.bf16.msra.mxu0 %v661_v62  ;;  %v665_v4 = vpack.c.bf16 %v202_v53, %v201_v52  ;;  %v19_v7 = vld [vmem:[%s1163_s0 + $0x20] sm:$0xff]  ;;  %v667_v56 = vpack.c.bf16 %v220_v58, %v219_v55  ;;  %v669_v17 = vpack.c.bf16 %v204_v1, %v203_v0  ;;  %vm473_vm1 = vcmask 25600  }
  0x2c   :  { %v32_v5 = vld [vmem:[%s1163_s0 + $0x88] sm:$0xff]  ;;  %v38_v6 = vld [vmem:[%s1163_s0 + $0xb8] sm:$0xff]  ;;  %v254_v8 = vsel %vm250_vm0, %v132_v60, %v126_v59  ;;  %v125_v9 = vmul.f32 0.0625, %v59_v61  ;;  %v131_v10 = vmul.f32 0.0625, %v101_v63  ;;  %664 = vmatprep.subr.bf16.mxu0 %v663_v47  ;;  %v25_v57 = vld [vmem:[%s1163_s0 + $0x50] sm:$0xff]  ;;  %v74_v15 = vadd.f32 %v26_v3, %v20_v2 }
  0x2d   :  { %v31_v62 = vld [vmem:[%s1163_s0 + $0x80] sm:$0xff]  ;;  %v37_v11 = vld [vmem:[%s1163_s0 + $0xb0] sm:$0xff]  ;;  %397 = vmatprep.mubr.f32.mxu1 %v254_v8  ;;  %v222_v13 = vld [vmem:[%s1164_s1 + $0x2b8] sm:$0xff]  ;;  %v116_v16 = vadd.f32 %v38_v6, %v32_v5  ;;  %v67_v18 = vadd.f32 %v25_v57, %v19_v7 }
  0x2e   :  { %v221_v12 = vld [vmem:[%s1164_s1 + $0x2b0] sm:$0xff]  ;;  %v253_v14 = vsel %vm250_vm0, %v131_v10, %v125_v9  ;;  %v109_v19 = vadd.f32 %v37_v11, %v31_v62  ;;  %v206_v22 = vld [vmem:[%s1164_s1 + $0x238] sm:$0xff]  ;;  %v75_v23 = vrot.slane %v74_v15, 4  ;;  %v223_v25 = vld [vmem:[%s1164_s1 + $0x2c0] sm:$0xff] }
  0x2f   :  { %398 = vmatmul.mubr.f32.vlgmr.msra.gmra.mrb[0].mxu1 %v253_v14  ;;  %666 = vmatpush3.bf16.msra.mxu0 %v665_v4  ;;  %v671_v20 = vpack.c.bf16 %v222_v13, %v221_v12  ;;  %v205_v21 = vld [vmem:[%s1164_s1 + $0x230] sm:$0xff]  ;;  %v117_v24 = vrot.slane %v116_v16, 4  ;;  %v224_v26 = vld [vmem:[%s1164_s1 + $0x2c8] sm:$0xff]  ;;  %v68_v27 = vrot.slane %v67_v18, 4  ;;  %v207_v35 = vld [vmem:[%s1164_s1 + $0x240] sm:$0xff] }
  0x30   :  { %668 = vmatprep.subr.bf16.mxu0 %v667_v56  ;;  %v110_v28 = vrot.slane %v109_v19, 4  ;;  %v76_v29 = vadd.f32 %v75_v23, %v74_v15  ;;  %v673_v31 = vpack.c.bf16 %v206_v22, %v205_v21  ;;  %v675_v34 = vpack.c.bf16 %v224_v26, %v223_v25  ;;  %v208_v36 = vld [vmem:[%s1164_s1 + $0x248] sm:$0xff]  ;;  %v225_v39 = vld [vmem:[%s1164_s1 + $0x2d0] sm:$0xff]  ;;  %v226_v40 = vld [vmem:[%s1164_s1 + $0x2d8] sm:$0xff] }
  0x31   :  { %v118_v30 = vadd.f32 %v117_v24, %v116_v16  ;;  %v69_v32 = vadd.f32 %v68_v27, %v67_v18  ;;  %v677_v45 = vpack.c.bf16 %v208_v36, %v207_v35  ;;  %v679_v48 = vpack.c.bf16 %v226_v40, %v225_v39  ;;  %v209_v49 = vld [vmem:[%s1164_s1 + $0x250] sm:$0xff]  ;;  %v210_v50 = vld [vmem:[%s1164_s1 + $0x258] sm:$0xff]  ;;  %v227_v53 = vld [vmem:[%s1164_s1 + $0x2e0] sm:$0xff] }
  0x32   :  { %v111_v33 = vadd.f32 %v110_v28, %v109_v19  ;;  %v77_v37 = vrot.slane %v76_v29, 2  ;;  %v228_v54 = vld [vmem:[%s1164_s1 + $0x2e8] sm:$0xff]  ;;  %v681_v59 = vpack.c.bf16 %v210_v50, %v209_v49  ;;  %v211_v0 = vld [vmem:[%s1164_s1 + $0x260] sm:$0xff]  ;;  %v229_v4 = vld [vmem:[%s1164_s1 + $0x2f0] sm:$0xff] }
  0x33   :  { %670 = vmatpush3.bf16.msra.mxu0 %v669_v17  ;;  %v119_v38 = vrot.slane %v118_v30, 2  ;;  %v70_v41 = vrot.slane %v69_v32, 2  ;;  %v683_v63 = vpack.c.bf16 %v228_v54, %v227_v53  ;;  %v212_v1 = vld [vmem:[%s1164_s1 + $0x268] sm:$0xff]  ;;  %v230_v5 = vld [vmem:[%s1164_s1 + $0x2f8] sm:$0xff]  ;;  %v213_v56 = vld [vmem:[%s1164_s1 + $0x270] sm:$0xff] }
  0x34   :  { %672 = vmatprep.subr.bf16.mxu0 %v671_v20  ;;  %v112_v42 = vrot.slane %v111_v33, 2  ;;  %v78_v43 = vadd.f32 %v77_v37, %v76_v29  ;;  %v685_v7 = vpack.c.bf16 %v212_v1, %v211_v0  ;;  %v687_v10 = vpack.c.bf16 %v230_v5, %v229_v4  ;;  %v214_v57 = vld [vmem:[%s1164_s1 + $0x278] sm:$0xff]  ;;  %v489_v16 = vld [vmem:[%s1165_s2] ss:$0 sm:$0xff]  ;;  %s716_s1 = smov [#allocation2]  }
  0x35   :  { %v120_v44 = vadd.f32 %v119_v38, %v118_v30  ;;  %v71_v46 = vadd.f32 %v70_v41, %v69_v32  ;;  %v689_v62 = vpack.c.bf16 %v214_v57, %v213_v56  ;;  %s481_s9 = sshll.u32 %s716_s1, 4  ;;  %s482_s9 = int_to_ptr.vmem [resolvable:$true] %s481_s9 }
  0x36   :  { %v113_v47 = vadd.f32 %v112_v42, %v111_v33  ;;  %v79_v51 = vrot.slane %v78_v43, 1  ;;  %s692_s10 = scalar_lea.vmem %s482_s9, 32  ;;  %p697_p1 = scmp.lt.s32.totalorder %s482_s9, %s482_s9 }
  0x37   :  { %674 = vmatpush3.bf16.msra.mxu0 %v673_v31  ;;  %v121_v52 = vrot.slane %v120_v44, 1  ;;  %v72_v60 = vrot.slane %v71_v46, 1  ;;  %p693_p0 = scmp.ne.s32.totalorder %s482_s9, %s692_s10  ;;  %p698_p2 = scmp.lt.s32.totalorder %s692_s10, %s692_s10 }
  0x38   :  { %676 = vmatprep.subr.bf16.mxu0 %v675_v34  ;;  %v80_v55 = vadd.f32 %v79_v51, %v78_v43  ;;  %v114_v61 = vrot.slane %v113_v47, 1 }
  0x39   :  { %v122_v58 = vadd.f32 %v121_v52, %v120_v44  ;;  %v73_v8 = vadd.f32 %v72_v60, %v71_v46  ;;  %p699_p3 = por %p698_p2, %p697_p1 }
  0x3a   :  { %v128_v2 = vmul.f32 0.0625, %v80_v55  ;;  %v115_v9 = vadd.f32 %v114_v61, %v113_v47 }
  0x3b   :  { %678 = vmatpush3.bf16.msra.mxu0 %v677_v45  ;;  %v134_v3 = vmul.f32 0.0625, %v122_v58  ;;  %v127_v11 = vmul.f32 0.0625, %v73_v8  ;;  %p700_p4 = pnand %p699_p3, %p693_p0 }
  0x3c   :  { %680 = vmatprep.subr.bf16.mxu0 %v679_v48  ;;  %v133_v12 = vmul.f32 0.0625, %v115_v9 }
  0x3d   :  { %v256_v6 = vsel %vm250_vm0, %v134_v3, %v128_v2 }
  0x3e   :  { %467 = vmatprep.mubr.f32.mxu0 %v256_v6  ;;  %v255_v13 = vsel %vm250_vm0, %v133_v12, %v127_v11 }
  0x3f   :  { %682 = vmatpush3.bf16.msra.mxu0 %v681_v59 }
  0x40   :  { %684 = vmatprep.subr.bf16.mxu0 %v683_v63 }
  0x43   :  { %686 = vmatpush3.bf16.msra.mxu0 %v685_v7 }
  0x44   :  { %688 = vmatprep.subr.bf16.mxu0 %v687_v10 }
  0x47   :  { %690 = vmatpush3.bf16.msra.mxu0 %v689_v62 }
  0x4a   :  { %468 = vmatmul.mubr.f32.vlgmr.msra.gmra.mrb[2].mxu0 %v255_v13 }
  0xfd   :  { %v522_v14 = vpop.f32.mrb[0].mxu0 }
  0xfe   :  { %v523_v15 = vpop.f32.mrb[1].mxu0 }
  0xff   :  { %v524_v17 = vadd.f32 %v523_v15, %v522_v14 }
 0x101   :  { %v330_v18 = vadd.f32 %v524_v17, %v489_v16 }
 0x102   :  { %v557_v19 = vpop.f32.mrb[0].mxu1 }
 0x103   :  { %v558_v20 = vpop.f32.mrb[1].mxu1 }
 0x104   :  { %v559_v21 = vadd.f32 %v558_v20, %v557_v19 }
 0x106   :  { %v400_v22 = vadd.f32 %v559_v21, %v330_v18 }
 0x11d   :  { %v592_v23 = vpop.f32.mrb[2].mxu0 }
 0x11e   :  { %v593_v24 = vpop.f32.mrb[3].mxu0 }
 0x11f   :  { %v594_v25 = vadd.f32 %v593_v24, %v592_v23 }
 0x121   :  { %v470_v26 = vadd.f32 %v594_v25, %v400_v22 }
 0x123   :  { %474 = vst.msk [vmem:[#allocation2] sm:$0x3] %vm473_vm1, %v470_v26 }
 0x124   :  { %703 = shalt.err (!%p700_p4)
}
 0x125   :  { %s704_s12 = scalar_lea.hbm %s1166_s3, 32 }
 0x126   :  { %p705_p5 = scmp.ne.s32.totalorder %s1166_s3, %s704_s12  ;;  %p708_p6 = scmp.lt.u32.totalorder %s704_s12, %s1166_s3 }
 0x128   :  { %p710_p7 = pnand %p708_p6, %p705_p5 }
 0x12a   :  { %713 = shalt.err (!%p710_p7)
}
 0x12b   :  { %484 = dma.vmem_to_hbm [thread:$0]  %s482_s9, 32, %s1166_s3, [#allocation3]  }
 0x12c   :  { %714 = dma.done.wait [#allocation3], 32  }
 0x12d   :  { %715 = vsyncadd [#allocation3], 4294967264 }
 0x12e   :  { %488 = vsyncpa [#allocation3], 1 }

</bundles_post_ra>
